<compile_context>
chip_gen: v6e
topology: v6e:2x2x1
jax: 0.10.0
libtpu: 0.0.40
codegen_flags: <defaults>
</compile_context>

<pallas_src>
import math

import jax
import jax.numpy as jnp
from jax.experimental import pallas as pl
from jax.experimental.pallas import tpu as pltpu


_LANE_CAP = 4096                 # max lane width for the lcm-packed slab row
_SMALL_OUTPUT_BYTES = 4 << 20    # below this, the fusable XLA broadcast wins


def _round_up(x, m):
    return ((x + m - 1) // m) * m


def _round_down(x, m):
    return (x // m) * m


def _tile_budget_bytes():
    """Per-generation output-tile budget (the pipeline double-buffers it)."""
    try:
        kind = jax.devices()[0].device_kind.lower()
    except Exception:
        kind = ""
    if ("v5 lite" in kind) or ("v5e" in kind) or ("v5litepod" in kind):
        return 6 << 20   # v5e: ~820 GB/s HBM, 16 MiB default scoped VMEM
    return 8 << 20       # v6e / v7x: 2x8 MiB double-buffered fits comfortably


def _choose_tile_rows(rows, max_tile_rows):
    """Row-tile: multiple of 8 (or == rows); >= 2 grid steps when possible."""
    if rows <= 8:
        return rows                      # single full-extent block
    # Cap at ~rows/2 so the grid has >= 2 steps -> both v7x TensorCores work.
    half = max(8, _round_down(rows // 2, 8))
    tile = max(8, min(max_tile_rows, half))
    steps = pl.cdiv(rows, tile)
    if steps > 1 and steps % 2 == 1:
        # Prefer an even step count (balanced TC split) when it costs nothing.
        cand = max(8, _round_up(pl.cdiv(rows, steps + 1), 8))
        if cand <= tile and pl.cdiv(rows, cand) % 2 == 0:
            tile = cand
    return tile


def _fixed_output_kernel(const_ref, out_ref):
    # const_ref: (1, L) lane-dense constant row, L % 128 == 0 (or L == full dim).
    # out_ref:   (tile_rows, L) output tile.  The sublane broadcast is VPU work
    # that hides completely under the HBM writeback (pure store-bound kernel).
    out_ref[...] = jnp.broadcast_to(const_ref[...], out_ref.shape)


def _fixed_output_pallas(batch_size, constant):
    n_outputs = constant.shape[0]

    # ---- lane-dense packing ------------------------------------------------
    lcm = math.lcm(n_outputs, 128)
    if lcm <= _LANE_CAP:
        lane_width = lcm
        rep = lane_width // n_outputs
        const_row = jnp.tile(constant, rep).reshape(1, lane_width)
        col_pad = 0
    else:
        # lcm blow-up (n_outputs ~coprime with 128): pad columns instead so the
        # minimum 8-row tile stays far below scoped/physical VMEM limits.
        lane_width = _round_up(n_outputs, 128)
        rep = 1
        col_pad = lane_width - n_outputs
        const_row = jnp.pad(constant, (0, col_pad)).reshape(1, lane_width)

    # Slab rows covering batch_size logical rows.  No row padding: Pallas masks
    # the ragged last output block (the (8,128) rule binds block_shape only).
    rows = pl.cdiv(batch_size, rep)

    # ---- row tiling ----------------------------------------------------------
    bytes_per_row = 4 * lane_width
    max_tile_rows = max(8, _round_down(_tile_budget_bytes() // bytes_per_row, 8))
    tile_rows = _choose_tile_rows(rows, max_tile_rows)
    grid = (pl.cdiv(rows, tile_rows),)

    tile_bytes = tile_rows * lane_width * 4
    const_bytes = lane_width * 4
    # Output tile is double-buffered; constant stays resident (count it twice to
    # be safe) + headroom for compiler-internal scratch.
    vmem_limit = int(2 * tile_bytes + 2 * const_bytes + (2 << 20))

    slab = pl.pallas_call(
        _fixed_output_kernel,
        out_shape=jax.ShapeDtypeStruct((rows, lane_width), jnp.float32),
        grid=grid,
        # Constant stays resident in VMEM (same block index every step).
        in_specs=[pl.BlockSpec((1, lane_width), lambda i: (0, 0))],
        out_specs=pl.BlockSpec((tile_rows, lane_width), lambda i: (i, 0)),
        compiler_params=pltpu.CompilerParams(
            dimension_semantics=("parallel",),
            vmem_limit_bytes=vmem_limit),
        cost_estimate=pl.CostEstimate(
            flops=0,
            transcendentals=0,
            bytes_accessed=int(rows * lane_width * 4 + const_bytes)),
    )(const_row)

    # ---- layout plumbing back to (batch, n_outputs) --------------------------
    if col_pad:
        # Column-padded fallback (rep == 1, rows == batch_size): strip zero pad.
        # TODO(synk): this column slice may materialize a copy for n_outputs
        # nearly coprime with 128; acceptable as the rare fallback path.
        return slab[:, :n_outputs]

    out = slab.reshape(rows * rep, n_outputs)
    if rows * rep != batch_size:
        # < rep extra rows; leading-dim prefix slice (cheap / usually elided).
        out = out[:batch_size]
    return out


def fixed_output(x, constant, *, small_batch_bypass=True):
    """Pallas equivalent of FixedOutput.forward.

    Args:
      x: any array whose leading dim is the batch size (contents ignored).
      constant: (n_outputs,) float32 parameter.
      small_batch_bypass: if True, small/medium outputs skip the Pallas launch
        (the XLA broadcast can fuse into consumers; a custom call never can).

    Returns:
      (batch_size, n_outputs) float32 array, each row == constant.
    """
    batch_size = x.shape[0]
    constant = constant.astype(jnp.float32)
    n_outputs = constant.shape[0]

    if small_batch_bypass and batch_size * n_outputs * 4 < _SMALL_OUTPUT_BYTES:
        return jnp.broadcast_to(constant[None, :], (batch_size, n_outputs))

    return _fixed_output_pallas(batch_size, constant)


if __name__ == "__main__":
    key = jax.random.PRNGKey(0)
    n_outputs = 32

    # --- module-default parameter (torch.ones init), tiny batch, forced Pallas
    #     path (rows < 8 -> single full-extent block, wrapper slice) -----------
    constant_ones = jnp.ones((n_outputs,), dtype=jnp.float32)
    batch = 2
    x = jax.random.normal(key, (batch, 16), dtype=jnp.float32)
    out = jax.block_until_ready(
        fixed_output(x, constant_ones, small_batch_bypass=False))
    ref = jnp.broadcast_to(constant_ones[None, :], (batch, n_outputs))
    assert out.shape == (batch, n_outputs) and out.dtype == jnp.float32
    assert jnp.array_equal(out, ref)

    # --- distinct per-lane values: verifies lane-packing reshape ordering with
    #     a ragged last output block (rows = 150, not a multiple of 8) and the
    #     no-slice path (600 % rep == 0) --------------------------------------
    constant_var = jnp.arange(n_outputs, dtype=jnp.float32) * 0.5 + 1.0
    batch2 = 600
    x2 = jax.random.normal(key, (batch2, 16), dtype=jnp.float32)
    out2 = jax.block_until_ready(
        fixed_output(x2, constant_var, small_batch_bypass=False))
    ref2 = jnp.broadcast_to(constant_var[None, :], (batch2, n_outputs))
    assert out2.shape == (batch2, n_outputs)
    assert jnp.array_equal(out2, ref2)

    # --- batch not divisible by rep: exercises the trailing prefix slice ------
    batch3 = 602
    x3 = jax.random.normal(key, (batch3, 16), dtype=jnp.float32)
    out3 = jax.block_until_ready(
        fixed_output(x3, constant_var, small_batch_bypass=False))
    ref3 = jnp.broadcast_to(constant_var[None, :], (batch3, n_outputs))
    assert out3.shape == (batch3, n_outputs)
    assert jnp.array_equal(out3, ref3)

    # --- lcm blow-up fallback (odd n_outputs -> column padding + strip) -------
    n_odd = 37
    constant_odd = jnp.arange(n_odd, dtype=jnp.float32) - 3.0
    batch4 = 20
    x4 = jax.random.normal(key, (batch4, 16), dtype=jnp.float32)
    out4 = jax.block_until_ready(
        fixed_output(x4, constant_odd, small_batch_bypass=False))
    ref4 = jnp.broadcast_to(constant_odd[None, :], (batch4, n_odd))
    assert out4.shape == (batch4, n_odd)
    assert jnp.array_equal(out4, ref4)

    # --- small-output fast path (no Pallas launch, fusable broadcast) ---------
    out5 = jax.block_until_ready(fixed_output(x, constant_var))
    assert jnp.array_equal(
        out5, jnp.broadcast_to(constant_var[None, :], (batch, n_outputs)))

    print("KERNEL_OK")
</pallas_src>

<mosaic_0001>
module attributes {stable_mosaic.version = 11 : i64} {
  func.func @_fixed_output_kernel(%arg0: i32, %arg1: memref<1x128xf32, #tpu.memory_space<vmem>>, %arg2: memref<1x128xf32, #tpu.memory_space<vmem>>) attributes {dimension_semantics = [#tpu.dimension_semantics<parallel>], iteration_bounds = array<i64: 1>, scalar_prefetch = 0 : i64, scratch_operands = 0 : i64, tpu.core_type = #tpu.core_type<tc>, window_params = [{pipeline_mode = #tpu.pipeline_mode<synchronous>, transform_indices = @transform_0, window_bounds = array<i64: 1, 128>}, {transform_indices = @transform_1, window_bounds = array<i64: 1, 128>}]} {
    %c0 = arith.constant 0 : index
    %c0_0 = arith.constant 0 : index
    %0 = vector.load %arg1[%c0, %c0_0] : memref<1x128xf32, #tpu.memory_space<vmem>>, vector<1x128xf32>
    %c0_1 = arith.constant 0 : index
    %c0_2 = arith.constant 0 : index
    %1 = vector.load %arg2[%c0_1, %c0_2] : memref<1x128xf32, #tpu.memory_space<vmem>>, vector<1x128xf32>
    tpu.vector_store %arg2[%c0_1, %c0_2], %0 {strides = array<i32>} : memref<1x128xf32, #tpu.memory_space<vmem>>, vector<1x128xf32>,
    return
  }
  func.func @transform_0(%arg0: i32) -> (i32, i32) {
    %c0_i32 = arith.constant 0 : i32
    %c0_i32_0 = arith.constant 0 : i32
    %c0_i32_1 = arith.constant 0 : i32
    return %c0_i32, %c0_i32_0 : i32, i32
  }
  func.func @transform_1(%arg0: i32) -> (i32, i32) {
    %c0_i32 = arith.constant 0 : i32
    %c0_i32_0 = arith.constant 0 : i32
    return %arg0, %c0_i32 : i32, i32
  }
}

</mosaic_0001>

<bundles_post_ra>
// kernel: tpu_custom_call.1
= control target key start
LH: loop header
LB: loop body
LE: loop exit
PB: predicated region body
PF: predicated region fallthrough
CT: control target
= control target key end

     0   :  { %6 = vsyncpa [#allocation3], 0  ;;  %s102_s0 = inlined_call_operand.hbm [shape: f32[1,128], index: 0, kind: input, shape index: {}]   ;;  %s103_s1 = inlined_call_operand.hbm [shape: f32[1,128], index: 1, kind: output, shape index: {}]  }
   0x1   :  { %7 = vsyncpa [#allocation4], 0  ;;  %s84_s6 = smov [#allocation2]  }
   0x2   :  { %s14_s7 = sshll.u32 %s84_s6, 4  ;;  %s15_s7 = int_to_ptr.vmem [resolvable:$true] %s14_s7 }
   0x3   :  { %s48_s8 = scalar_lea.vmem %s15_s7, 16  ;;  %s52_s9 = scalar_lea.vmem %s15_s7, 32 }
   0x4   :  { %p49_p0 = scmp.ne.s32.totalorder %s15_s7, %s48_s8  ;;  %p53_p1 = scmp.lt.s32.totalorder %s15_s7, %s15_s7 }
   0x5   :  { %p54_p2 = scmp.lt.s32.totalorder %s52_s9, %s48_s8 }
   0x7   :  { %p55_p3 = por %p54_p2, %p53_p1 }
   0x9   :  { %p56_p4 = pnand %p55_p3, %p49_p0 }
   0xb   :  { %59 = shalt.err (!%p56_p4)
}
   0xc   :  { %17 = dma.hbm_to_vmem [thread:$0]  %s102_s0, 16, %s15_s7, [#allocation3]  }
   0xd   :  { %80 = dma.done.wait [#allocation3], 16  }
   0xe   :  { %81 = vsyncadd [#allocation3], 4294967280  ;;  %s85_s12 = smov [#allocation5]   ;;  %v21_v0 = vld [vmem:[#allocation2] sm:$0x1] }
   0xf   :  { %s29_s13 = sshll.u32 %s85_s12, 4  ;;  %22 = vst [vmem:[#allocation5] sm:$0x1] %v21_v0  ;;  %s30_s13 = int_to_ptr.vmem [resolvable:$true] %s29_s13 }
  0x10   :  { %s60_s14 = scalar_lea.vmem %s30_s13, 16  ;;  %s64_s15 = scalar_lea.vmem %s30_s13, 32 }
  0x11   :  { %p61_p5 = scmp.ne.s32.totalorder %s30_s13, %s60_s14  ;;  %p65_p6 = scmp.lt.s32.totalorder %s30_s13, %s30_s13 }
  0x12   :  { %p66_p7 = scmp.lt.s32.totalorder %s64_s15, %s60_s14 }
  0x14   :  { %p67_p8 = por %p66_p7, %p65_p6 }
  0x16   :  { %p68_p9 = pnand %p67_p8, %p61_p5 }
  0x18   :  { %71 = shalt.err (!%p68_p9)
}
  0x19   :  { %32 = dma.vmem_to_hbm [thread:$0]  %s30_s13, 16, %s103_s1, [#allocation4]  }
  0x1a   :  { %82 = dma.done.wait [#allocation4], 16  }
  0x1b   :  { %83 = vsyncadd [#allocation4], 4294967280 }
  0x1c   :  { %36 = vsyncpa [#allocation3], 1 }
  0x1d   :  { %37 = vsyncpa [#allocation4], 1 }

</bundles_post_ra>
